<compile_context>
chip_gen: v6e
topology: v6e:2x2x1
jax: 0.10.0
libtpu: 0.0.40
codegen_flags: <defaults>
</compile_context>

<pallas_src>
import jax
import jax.numpy as jnp
import numpy as np
from jax import lax
from jax.experimental import pallas as pl
from jax.experimental.pallas import tpu as pltpu

LANE = 128  # lane-dense output width for the dense head


# ---------------------- fused recurrence (+ dense head) kernel ----------------------
def _tclstm_kernel(lens_ref, gx_ref, whh_ref, wd_ref, bd_ref, out_ref):
    # lens_ref: (2B, 1) i32   valid lengths (left rows 0..B-1, right rows B..2B-1)
    # gx_ref  : (T, 2B, 4H)   precomputed x-projection, time-major, g-gate columns pre-scaled by 2
    # whh_ref : (2H, 4H)      [W_hh_l^T ; W_hh_r^T] (block-diagonal trick), g columns pre-scaled
    # wd_ref  : (2H, 128)     dense weight^T zero-padded to 128 lanes;  bd_ref: (1, 128)
    T, TWOB, G = gx_ref.shape
    H = G // 4
    B = TWOB // 2

    whh = whh_ref[...]
    lens = lens_ref[...]                                             # (2B, 1)

    # ---- hoisted masks: one compare / broadcast for all T steps ----
    t_io = lax.broadcasted_iota(jnp.int32, (T, TWOB, 1), 0)
    step = lens[None, :, :] > t_io                                   # (T, 2B, 1) bool
    masks_c = jnp.broadcast_to(step, (T, TWOB, H))                   # cell-state freeze masks
    row = lax.broadcasted_iota(jnp.int32, (TWOB, 2 * H), 0)
    col = lax.broadcasted_iota(jnp.int32, (TWOB, 2 * H), 1)
    dirm = (row < B) == (col < H)                                    # (2B, 2H): left rows -> cols :H
    masks_h = jnp.logical_and(jnp.broadcast_to(step, (T, TWOB, 2 * H)), dirm[None])

    # h_pad carries [h_l, 0] on left rows and [0, h_r] on right rows -> one fused MXU matmul.
    h_pad = jnp.zeros((TWOB, 2 * H), jnp.float32)
    c = jnp.zeros((TWOB, H), jnp.float32)

    # T is small and static: fully unrolled in-kernel time loop (no per-step grid overhead).
    for t in range(T):
        gates = gx_ref[t] + jnp.dot(h_pad, whh,
                                    preferred_element_type=jnp.float32)   # (2B, 4H)
        sig = jax.nn.sigmoid(gates)               # single full-tile transcendental per step
        i_g = sig[:, 0 * H:1 * H]
        f_g = sig[:, 1 * H:2 * H]
        g_g = 2.0 * sig[:, 2 * H:3 * H] - 1.0     # == tanh(pre_g): g columns pre-scaled by 2
        o_g = sig[:, 3 * H:4 * H]
        c_new = f_g * c + i_g * g_g
        h_new = o_g * jnp.tanh(c_new)             # only remaining (quarter-tile) tanh
        # pack_padded_sequence emulation + direction zeroing folded into one select each
        c = jnp.where(masks_c[t], c_new, c)
        hh = jnp.concatenate([h_new, h_new], axis=-1)                 # (2B, 2H)
        h_pad = jnp.where(masks_h[t], hh, h_pad)

    # fused dense head: [h_l, h_r] @ W_dense^T + b, stored as an unmasked (2B, 128) block
    h_cat = h_pad[:B, :] + h_pad[B:, :]                               # (B, 2H) = [h_l, h_r]
    h_full = jnp.concatenate([h_cat, jnp.zeros_like(h_cat)], axis=0)  # (2B, 2H)
    out_ref[...] = (jnp.dot(h_full, wd_ref[...], preferred_element_type=jnp.float32)
                    + bd_ref[...])


def _tclstm_recurrence(lens, gx_tm, whh_stack, wd_pad, bd_pad):
    """lens: (2B,1) i32, gx_tm: (T,2B,4H) f32, whh_stack: (2H,4H), wd_pad: (2H,128), bd_pad: (1,128)."""
    T, TWOB, G = gx_tm.shape
    H = G // 4
    return pl.pallas_call(
        _tclstm_kernel,
        out_shape=jax.ShapeDtypeStruct((TWOB, LANE), jnp.float32),
        grid=(1,),
        in_specs=[
            pl.BlockSpec((TWOB, 1), lambda i: (0, 0)),          # lengths
            # NOTE(v7x): resident gx costs T*2B*4H*4 B (~32 KB here). If T/H grow, switch to a
            # chunked time grid axis sized against v7x's 32 MiB scoped / 64 MiB physical VMEM.
            pl.BlockSpec((T, TWOB, G), lambda i: (0, 0, 0)),    # precomputed gates_x (resident)
            pl.BlockSpec((2 * H, G), lambda i: (0, 0)),         # stacked W_hh^T
            pl.BlockSpec((2 * H, LANE), lambda i: (0, 0)),      # dense W^T (lane-padded)
            pl.BlockSpec((1, LANE), lambda i: (0, 0)),          # dense bias (lane-padded)
        ],
        out_specs=pl.BlockSpec((TWOB, LANE), lambda i: (0, 0)),
        compiler_params=pltpu.CompilerParams(dimension_semantics=("arbitrary",)),
    )(lens, gx_tm, whh_stack, wd_pad, bd_pad)


# --------------------------------- TC_LSTM forward ---------------------------------
@jax.jit
def tc_lstm_forward(params, x_l, x_r, target):
    emb = params["embedding"]
    E = emb.shape[1]
    B, T_l = x_l.shape
    _, T_r = x_r.shape
    H = params["whh_l_T"].shape[0]
    P = params["w_dense_T"].shape[1]

    x_l_len = jnp.sum(x_l != 0, axis=-1).astype(jnp.int32)
    x_r_len = jnp.sum(x_r != 0, axis=-1).astype(jnp.int32)
    # NOTE: matches torch semantics — an all-padding target row would divide by zero.
    target_len = jnp.sum(target != 0, axis=-1).astype(jnp.float32)[:, None]

    e_l, e_r, e_t = emb[x_l], emb[x_r], emb[target]               # embedding gathers (fused by XLA)
    v_target = e_t.sum(axis=1) / target_len                       # (B, E)

    # pad both directions to a common T (padded steps are masked out by the length freeze)
    T = max(T_l, T_r)
    if T_l < T:
        e_l = jnp.pad(e_l, ((0, 0), (0, T - T_l), (0, 0)))
    if T_r < T:
        e_r = jnp.pad(e_r, ((0, 0), (0, T - T_r), (0, 0)))

    # Hoisted input projection, directly in stacked time-major layout:
    # one batched GEMM for the token-embedding term, one tiny GEMM for the time-invariant
    # v_target term (W_ih^T rows [:E] act on tokens, rows [E:] on v_target).
    e_stack = jnp.stack([e_l, e_r], axis=0)                                        # (2, B, T, E)
    wih_emb = jnp.stack([params["wih_l_T"][:E], params["wih_r_T"][:E]], axis=0)    # (2, E, 4H)
    wih_vt = jnp.stack([params["wih_l_T"][E:], params["wih_r_T"][E:]], axis=0)     # (2, E, 4H)
    b_stack = jnp.stack([params["b_l"], params["b_r"]], axis=0)                    # (2, 1, 4H)

    gx = jnp.einsum('dbte,deg->tdbg', e_stack, wih_emb)                            # (T, 2, B, 4H)
    gconst = jnp.einsum('be,deg->dbg', v_target, wih_vt) + b_stack                 # (2, B, 4H)
    gx = gx + gconst[None]

    # Pre-scale the g-gate (cell input) columns by 2 so the kernel can use one full-tile
    # sigmoid for all four gates (tanh(x) == 2*sigmoid(2x) - 1; scaling by 2 is exact in fp).
    gscale = jnp.concatenate([jnp.ones((2 * H,), jnp.float32),
                              jnp.full((H,), 2.0, jnp.float32),
                              jnp.ones((H,), jnp.float32)])
    gx_tm = (gx * gscale).reshape(T, 2 * B, 4 * H).astype(jnp.float32)             # (T, 2B, 4H)
    whh_stack = jnp.concatenate([params["whh_l_T"], params["whh_r_T"]], axis=0) * gscale

    lens = jnp.concatenate([x_l_len, x_r_len], axis=0)[:, None]                    # (2B, 1)

    wd_pad = jnp.zeros((2 * H, LANE), jnp.float32).at[:, :P].set(params["w_dense_T"])
    bd_pad = jnp.zeros((1, LANE), jnp.float32).at[:, :P].set(params["b_dense"])

    out_full = _tclstm_recurrence(lens, gx_tm, whh_stack, wd_pad, bd_pad)          # (2B, 128)
    return out_full[:B, :P]


# ------------------------------- pure-JAX reference -------------------------------
def _lstm_ref(x_bt, lens, wihT, whhT, b):
    B, T, _ = x_bt.shape
    H = whhT.shape[0]
    h = jnp.zeros((B, H), jnp.float32)
    c = jnp.zeros((B, H), jnp.float32)
    for t in range(T):
        gates = x_bt[:, t] @ wihT + h @ whhT + b
        i = jax.nn.sigmoid(gates[:, :H])
        f = jax.nn.sigmoid(gates[:, H:2 * H])
        g = jnp.tanh(gates[:, 2 * H:3 * H])
        o = jax.nn.sigmoid(gates[:, 3 * H:])
        c_new = f * c + i * g
        h_new = o * jnp.tanh(c_new)
        m = (lens > t)[:, None]
        h = jnp.where(m, h_new, h)
        c = jnp.where(m, c_new, c)
    return h


def tc_lstm_ref(params, x_l, x_r, target):
    emb = params["embedding"]
    x_l_len = jnp.sum(x_l != 0, axis=-1)
    x_r_len = jnp.sum(x_r != 0, axis=-1)
    target_len = jnp.sum(target != 0, axis=-1).astype(jnp.float32)[:, None, None]
    e_l, e_r, e_t = emb[x_l], emb[x_r], emb[target]
    v_target = e_t.sum(axis=1, keepdims=True) / target_len
    xl = jnp.concatenate([e_l, jnp.broadcast_to(v_target, e_l.shape)], axis=2)
    xr = jnp.concatenate([e_r, jnp.broadcast_to(v_target, e_r.shape)], axis=2)
    h_l = _lstm_ref(xl, x_l_len, params["wih_l_T"], params["whh_l_T"], params["b_l"])
    h_r = _lstm_ref(xr, x_r_len, params["wih_r_T"], params["whh_r_T"], params["b_r"])
    h_n = jnp.concatenate([h_l, h_r], axis=-1)
    return h_n @ params["w_dense_T"] + params["b_dense"]


# -------------------------------------- main --------------------------------------
if __name__ == "__main__":
    B, L_L, L_R, L_T = 4, 8, 8, 4
    VOCAB, E, H, P = 20, 32, 32, 3

    key = jax.random.PRNGKey(0)
    ks = jax.random.split(key, 12)

    def u(k, shape, s=0.1):
        return jax.random.uniform(k, shape, jnp.float32, -s, s)

    params = {
        "embedding": u(ks[0], (VOCAB, E), 1.0),
        # lstm_l:  nn.LSTM(input=2E, hidden=H) — weights stored pre-transposed (in_dim, 4H)
        "wih_l_T": u(ks[1], (2 * E, 4 * H)),
        "whh_l_T": u(ks[2], (H, 4 * H)),
        "b_l": u(ks[3], (1, 4 * H)) + u(ks[4], (1, 4 * H)),   # b_ih + b_hh
        # lstm_r
        "wih_r_T": u(ks[5], (2 * E, 4 * H)),
        "whh_r_T": u(ks[6], (H, 4 * H)),
        "b_r": u(ks[7], (1, 4 * H)) + u(ks[8], (1, 4 * H)),
        # dense: Linear(2H -> P)
        "w_dense_T": u(ks[9], (2 * H, P)),
        "b_dense": u(ks[10], (1, P)),
    }

    # deterministic padded token ids (padding id 0 at the tail, all lengths >= 1)
    def make_tokens(k, L, lens):
        toks = jax.random.randint(k, (B, L), 1, VOCAB, jnp.int32)
        valid = jnp.arange(L)[None, :] < jnp.asarray(lens)[:, None]
        return jnp.where(valid, toks, 0)

    kk = jax.random.split(ks[11], 3)
    x_l = make_tokens(kk[0], L_L, [8, 5, 3, 7])
    x_r = make_tokens(kk[1], L_R, [6, 8, 4, 2])
    target = make_tokens(kk[2], L_T, [2, 4, 1, 3])

    out = tc_lstm_forward(params, x_l, x_r, target)
    out = jax.block_until_ready(out)

    ref = tc_lstm_ref(params, x_l, x_r, target)
    np.testing.assert_allclose(np.asarray(out), np.asarray(ref), rtol=1e-4, atol=1e-5)

    print("KERNEL_OK")
</pallas_src>

<mosaic_0001>
module attributes {stable_mosaic.version = 11 : i64} {
  func.func @_tclstm_kernel(%arg0: i32, %arg1: memref<8x1xi32, #tpu.memory_space<vmem>>, %arg2: memref<8x8x128xf32, #tpu.memory_space<vmem>>, %arg3: memref<64x128xf32, #tpu.memory_space<vmem>>, %arg4: memref<64x128xf32, #tpu.memory_space<vmem>>, %arg5: memref<1x128xf32, #tpu.memory_space<vmem>>, %arg6: memref<8x128xf32, #tpu.memory_space<vmem>>) attributes {dimension_semantics = [#tpu.dimension_semantics<arbitrary>], iteration_bounds = array<i64: 1>, scalar_prefetch = 0 : i64, scratch_operands = 0 : i64, tpu.core_type = #tpu.core_type<tc>, window_params = [{pipeline_mode = #tpu.pipeline_mode<synchronous>, transform_indices = @transform_0, window_bounds = array<i64: 8, 1>}, {pipeline_mode = #tpu.pipeline_mode<synchronous>, transform_indices = @transform_1, window_bounds = array<i64: 8, 8, 128>}, {pipeline_mode = #tpu.pipeline_mode<synchronous>, transform_indices = @transform_2, window_bounds = array<i64: 64, 128>}, {pipeline_mode = #tpu.pipeline_mode<synchronous>, transform_indices = @transform_3, window_bounds = array<i64: 64, 128>}, {pipeline_mode = #tpu.pipeline_mode<synchronous>, transform_indices = @transform_4, window_bounds = array<i64: 1, 128>}, {pipeline_mode = #tpu.pipeline_mode<synchronous>, transform_indices = @transform_5, window_bounds = array<i64: 8, 128>}]} {
    %c0 = arith.constant 0 : index
    %c0_0 = arith.constant 0 : index
    %0 = vector.load %arg3[%c0, %c0_0] : memref<64x128xf32, #tpu.memory_space<vmem>>, vector<64x128xf32>
    %c0_1 = arith.constant 0 : index
    %c0_2 = arith.constant 0 : index
    %1 = vector.load %arg1[%c0_1, %c0_2] : memref<8x1xi32, #tpu.memory_space<vmem>>, vector<8x1xi32>
    %2 = tpu.iota {dimensions = array<i32: 0>} : vector<8x8x1xi32>
    %3 = vector.shape_cast %1 : vector<8x1xi32> to vector<1x8x1xi32>
    %4 = vector.broadcast %3 : vector<1x8x1xi32> to vector<8x8x1xi32>
    %5 = arith.cmpi sgt, %4, %2 : vector<8x8x1xi32>
    %6 = vector.shape_cast %5 : vector<8x8x1xi1> to vector<8x8x1xi1>
    %7 = vector.broadcast %6 : vector<8x8x1xi1> to vector<8x8x32xi1>
    %8 = tpu.iota {dimensions = array<i32: 0>} : vector<8x64xi32>
    %9 = tpu.iota {dimensions = array<i32: 1>} : vector<8x64xi32>
    %c4_i32 = arith.constant 4 : i32
    %10 = vector.broadcast %c4_i32 : i32 to vector<8x64xi32>
    %11 = arith.cmpi slt, %8, %10 : vector<8x64xi32>
    %c32_i32 = arith.constant 32 : i32
    %12 = vector.broadcast %c32_i32 : i32 to vector<8x64xi32>
    %13 = arith.cmpi slt, %9, %12 : vector<8x64xi32>
    %14 = arith.xori %11, %13 : vector<8x64xi1>
    %cst = arith.constant dense<true> : vector<8x64xi1>
    %15 = arith.xori %14, %cst : vector<8x64xi1>
    %16 = vector.shape_cast %5 : vector<8x8x1xi1> to vector<8x8x1xi1>
    %17 = vector.broadcast %16 : vector<8x8x1xi1> to vector<8x8x64xi1>
    %18 = vector.shape_cast %15 : vector<8x64xi1> to vector<1x8x64xi1>
    %19 = vector.broadcast %18 : vector<1x8x64xi1> to vector<8x8x64xi1>
    %20 = arith.andi %17, %19 : vector<8x8x64xi1>
    %cst_3 = arith.constant 0.000000e+00 : f32
    %21 = vector.broadcast %cst_3 : f32 to vector<8x64xf32>
    %cst_4 = arith.constant 0.000000e+00 : f32
    %22 = vector.broadcast %cst_4 : f32 to vector<8x32xf32>
    %c0_5 = arith.constant 0 : index
    %c0_6 = arith.constant 0 : index
    %c0_7 = arith.constant 0 : index
    %23 = vector.load %arg2[%c0_5, %c0_6, %c0_7] : memref<8x8x128xf32, #tpu.memory_space<vmem>>, vector<1x8x128xf32>
    %24 = vector.shape_cast %23 : vector<1x8x128xf32> to vector<8x128xf32>
    %cst_8 = arith.constant dense<0.000000e+00> : vector<8x128xf32>
    %25 = tpu.matmul %21, %0, %cst_8 {dimension_numbers = #tpu.dot_dimension_numbers<[1], [0], [0], [1], [0, 0, 1, 1], [], []>} : vector<8x64xf32>, vector<64x128xf32>, vector<8x128xf32> -> vector<8x128xf32>
    %26 = arith.addf %24, %25 : vector<8x128xf32>
    %27 = arith.negf %26 : vector<8x128xf32>
    %28 = math.exp %27 : vector<8x128xf32>
    %cst_9 = arith.constant 1.000000e+00 : f32
    %29 = vector.broadcast %cst_9 : f32 to vector<8x128xf32>
    %30 = arith.addf %29, %28 : vector<8x128xf32>
    %31 = arith.divf %29, %30 : vector<8x128xf32>
    %32 = vector.extract_strided_slice %31 {offsets = [0, 0], sizes = [8, 32], strides = [1, 1]} : vector<8x128xf32> to vector<8x32xf32>
    %33 = vector.extract_strided_slice %31 {offsets = [0, 32], sizes = [8, 32], strides = [1, 1]} : vector<8x128xf32> to vector<8x32xf32>
    %34 = vector.extract_strided_slice %31 {offsets = [0, 64], sizes = [8, 32], strides = [1, 1]} : vector<8x128xf32> to vector<8x32xf32>
    %cst_10 = arith.constant 2.000000e+00 : f32
    %35 = vector.broadcast %cst_10 : f32 to vector<8x32xf32>
    %36 = arith.mulf %35, %34 : vector<8x32xf32>
    %cst_11 = arith.constant 1.000000e+00 : f32
    %37 = vector.broadcast %cst_11 : f32 to vector<8x32xf32>
    %38 = arith.subf %36, %37 : vector<8x32xf32>
    %39 = vector.extract_strided_slice %31 {offsets = [0, 96], sizes = [8, 32], strides = [1, 1]} : vector<8x128xf32> to vector<8x32xf32>
    %40 = arith.mulf %33, %22 : vector<8x32xf32>
    %41 = arith.mulf %32, %38 : vector<8x32xf32>
    %42 = arith.addf %40, %41 : vector<8x32xf32>
    %43 = math.tanh %42 : vector<8x32xf32>
    %44 = arith.mulf %39, %43 : vector<8x32xf32>
    %45 = vector.extract_strided_slice %7 {offsets = [0, 0, 0], sizes = [1, 8, 32], strides = [1, 1, 1]} : vector<8x8x32xi1> to vector<1x8x32xi1>
    %46 = vector.shape_cast %45 : vector<1x8x32xi1> to vector<8x32xi1>
    %47 = arith.select %46, %42, %22 : vector<8x32xi1>, vector<8x32xf32>
    %48 = tpu.concatenate %44, %44 in 1 : vector<8x32xf32>, vector<8x32xf32> -> vector<8x64xf32>
    %49 = vector.extract_strided_slice %20 {offsets = [0, 0, 0], sizes = [1, 8, 64], strides = [1, 1, 1]} : vector<8x8x64xi1> to vector<1x8x64xi1>
    %50 = vector.shape_cast %49 : vector<1x8x64xi1> to vector<8x64xi1>
    %51 = arith.select %50, %48, %21 : vector<8x64xi1>, vector<8x64xf32>
    %c1 = arith.constant 1 : index
    %c0_12 = arith.constant 0 : index
    %c0_13 = arith.constant 0 : index
    %52 = vector.load %arg2[%c1, %c0_12, %c0_13] : memref<8x8x128xf32, #tpu.memory_space<vmem>>, vector<1x8x128xf32>
    %53 = vector.shape_cast %52 : vector<1x8x128xf32> to vector<8x128xf32>
    %cst_14 = arith.constant dense<0.000000e+00> : vector<8x128xf32>
    %54 = tpu.matmul %51, %0, %cst_14 {dimension_numbers = #tpu.dot_dimension_numbers<[1], [0], [0], [1], [0, 0, 1, 1], [], []>} : vector<8x64xf32>, vector<64x128xf32>, vector<8x128xf32> -> vector<8x128xf32>
    %55 = arith.addf %53, %54 : vector<8x128xf32>
    %56 = arith.negf %55 : vector<8x128xf32>
    %57 = math.exp %56 : vector<8x128xf32>
    %cst_15 = arith.constant 1.000000e+00 : f32
    %58 = vector.broadcast %cst_15 : f32 to vector<8x128xf32>
    %59 = arith.addf %58, %57 : vector<8x128xf32>
    %60 = arith.divf %58, %59 : vector<8x128xf32>
    %61 = vector.extract_strided_slice %60 {offsets = [0, 0], sizes = [8, 32], strides = [1, 1]} : vector<8x128xf32> to vector<8x32xf32>
    %62 = vector.extract_strided_slice %60 {offsets = [0, 32], sizes = [8, 32], strides = [1, 1]} : vector<8x128xf32> to vector<8x32xf32>
    %63 = vector.extract_strided_slice %60 {offsets = [0, 64], sizes = [8, 32], strides = [1, 1]} : vector<8x128xf32> to vector<8x32xf32>
    %cst_16 = arith.constant 2.000000e+00 : f32
    %64 = vector.broadcast %cst_16 : f32 to vector<8x32xf32>
    %65 = arith.mulf %64, %63 : vector<8x32xf32>
    %cst_17 = arith.constant 1.000000e+00 : f32
    %66 = vector.broadcast %cst_17 : f32 to vector<8x32xf32>
    %67 = arith.subf %65, %66 : vector<8x32xf32>
    %68 = vector.extract_strided_slice %60 {offsets = [0, 96], sizes = [8, 32], strides = [1, 1]} : vector<8x128xf32> to vector<8x32xf32>
    %69 = arith.mulf %62, %47 : vector<8x32xf32>
    %70 = arith.mulf %61, %67 : vector<8x32xf32>
    %71 = arith.addf %69, %70 : vector<8x32xf32>
    %72 = math.tanh %71 : vector<8x32xf32>
    %73 = arith.mulf %68, %72 : vector<8x32xf32>
    %74 = vector.extract_strided_slice %7 {offsets = [1, 0, 0], sizes = [1, 8, 32], strides = [1, 1, 1]} : vector<8x8x32xi1> to vector<1x8x32xi1>
    %75 = vector.shape_cast %74 : vector<1x8x32xi1> to vector<8x32xi1>
    %76 = arith.select %75, %71, %47 : vector<8x32xi1>, vector<8x32xf32>
    %77 = tpu.concatenate %73, %73 in 1 : vector<8x32xf32>, vector<8x32xf32> -> vector<8x64xf32>
    %78 = vector.extract_strided_slice %20 {offsets = [1, 0, 0], sizes = [1, 8, 64], strides = [1, 1, 1]} : vector<8x8x64xi1> to vector<1x8x64xi1>
    %79 = vector.shape_cast %78 : vector<1x8x64xi1> to vector<8x64xi1>
    %80 = arith.select %79, %77, %51 : vector<8x64xi1>, vector<8x64xf32>
    %c2 = arith.constant 2 : index
    %c0_18 = arith.constant 0 : index
    %c0_19 = arith.constant 0 : index
    %81 = vector.load %arg2[%c2, %c0_18, %c0_19] : memref<8x8x128xf32, #tpu.memory_space<vmem>>, vector<1x8x128xf32>
    %82 = vector.shape_cast %81 : vector<1x8x128xf32> to vector<8x128xf32>
    %cst_20 = arith.constant dense<0.000000e+00> : vector<8x128xf32>
    %83 = tpu.matmul %80, %0, %cst_20 {dimension_numbers = #tpu.dot_dimension_numbers<[1], [0], [0], [1], [0, 0, 1, 1], [], []>} : vector<8x64xf32>, vector<64x128xf32>, vector<8x128xf32> -> vector<8x128xf32>
    %84 = arith.addf %82, %83 : vector<8x128xf32>
    %85 = arith.negf %84 : vector<8x128xf32>
    %86 = math.exp %85 : vector<8x128xf32>
    %cst_21 = arith.constant 1.000000e+00 : f32
    %87 = vector.broadcast %cst_21 : f32 to vector<8x128xf32>
    %88 = arith.addf %87, %86 : vector<8x128xf32>
    %89 = arith.divf %87, %88 : vector<8x128xf32>
    %90 = vector.extract_strided_slice %89 {offsets = [0, 0], sizes = [8, 32], strides = [1, 1]} : vector<8x128xf32> to vector<8x32xf32>
    %91 = vector.extract_strided_slice %89 {offsets = [0, 32], sizes = [8, 32], strides = [1, 1]} : vector<8x128xf32> to vector<8x32xf32>
    %92 = vector.extract_strided_slice %89 {offsets = [0, 64], sizes = [8, 32], strides = [1, 1]} : vector<8x128xf32> to vector<8x32xf32>
    %cst_22 = arith.constant 2.000000e+00 : f32
    %93 = vector.broadcast %cst_22 : f32 to vector<8x32xf32>
    %94 = arith.mulf %93, %92 : vector<8x32xf32>
    %cst_23 = arith.constant 1.000000e+00 : f32
    %95 = vector.broadcast %cst_23 : f32 to vector<8x32xf32>
    %96 = arith.subf %94, %95 : vector<8x32xf32>
    %97 = vector.extract_strided_slice %89 {offsets = [0, 96], sizes = [8, 32], strides = [1, 1]} : vector<8x128xf32> to vector<8x32xf32>
    %98 = arith.mulf %91, %76 : vector<8x32xf32>
    %99 = arith.mulf %90, %96 : vector<8x32xf32>
    %100 = arith.addf %98, %99 : vector<8x32xf32>
    %101 = math.tanh %100 : vector<8x32xf32>
    %102 = arith.mulf %97, %101 : vector<8x32xf32>
    %103 = vector.extract_strided_slice %7 {offsets = [2, 0, 0], sizes = [1, 8, 32], strides = [1, 1, 1]} : vector<8x8x32xi1> to vector<1x8x32xi1>
    %104 = vector.shape_cast %103 : vector<1x8x32xi1> to vector<8x32xi1>
    %105 = arith.select %104, %100, %76 : vector<8x32xi1>, vector<8x32xf32>
    %106 = tpu.concatenate %102, %102 in 1 : vector<8x32xf32>, vector<8x32xf32> -> vector<8x64xf32>
    %107 = vector.extract_strided_slice %20 {offsets = [2, 0, 0], sizes = [1, 8, 64], strides = [1, 1, 1]} : vector<8x8x64xi1> to vector<1x8x64xi1>
    %108 = vector.shape_cast %107 : vector<1x8x64xi1> to vector<8x64xi1>
    %109 = arith.select %108, %106, %80 : vector<8x64xi1>, vector<8x64xf32>
    %c3 = arith.constant 3 : index
    %c0_24 = arith.constant 0 : index
    %c0_25 = arith.constant 0 : index
    %110 = vector.load %arg2[%c3, %c0_24, %c0_25] : memref<8x8x128xf32, #tpu.memory_space<vmem>>, vector<1x8x128xf32>
    %111 = vector.shape_cast %110 : vector<1x8x128xf32> to vector<8x128xf32>
    %cst_26 = arith.constant dense<0.000000e+00> : vector<8x128xf32>
    %112 = tpu.matmul %109, %0, %cst_26 {dimension_numbers = #tpu.dot_dimension_numbers<[1], [0], [0], [1], [0, 0, 1, 1], [], []>} : vector<8x64xf32>, vector<64x128xf32>, vector<8x128xf32> -> vector<8x128xf32>
    %113 = arith.addf %111, %112 : vector<8x128xf32>
    %114 = arith.negf %113 : vector<8x128xf32>
    %115 = math.exp %114 : vector<8x128xf32>
    %cst_27 = arith.constant 1.000000e+00 : f32
    %116 = vector.broadcast %cst_27 : f32 to vector<8x128xf32>
    %117 = arith.addf %116, %115 : vector<8x128xf32>
    %118 = arith.divf %116, %117 : vector<8x128xf32>
    %119 = vector.extract_strided_slice %118 {offsets = [0, 0], sizes = [8, 32], strides = [1, 1]} : vector<8x128xf32> to vector<8x32xf32>
    %120 = vector.extract_strided_slice %118 {offsets = [0, 32], sizes = [8, 32], strides = [1, 1]} : vector<8x128xf32> to vector<8x32xf32>
    %121 = vector.extract_strided_slice %118 {offsets = [0, 64], sizes = [8, 32], strides = [1, 1]} : vector<8x128xf32> to vector<8x32xf32>
    %cst_28 = arith.constant 2.000000e+00 : f32
    %122 = vector.broadcast %cst_28 : f32 to vector<8x32xf32>
    %123 = arith.mulf %122, %121 : vector<8x32xf32>
    %cst_29 = arith.constant 1.000000e+00 : f32
    %124 = vector.broadcast %cst_29 : f32 to vector<8x32xf32>
    %125 = arith.subf %123, %124 : vector<8x32xf32>
    %126 = vector.extract_strided_slice %118 {offsets = [0, 96], sizes = [8, 32], strides = [1, 1]} : vector<8x128xf32> to vector<8x32xf32>
    %127 = arith.mulf %120, %105 : vector<8x32xf32>
    %128 = arith.mulf %119, %125 : vector<8x32xf32>
    %129 = arith.addf %127, %128 : vector<8x32xf32>
    %130 = math.tanh %129 : vector<8x32xf32>
    %131 = arith.mulf %126, %130 : vector<8x32xf32>
    %132 = vector.extract_strided_slice %7 {offsets = [3, 0, 0], sizes = [1, 8, 32], strides = [1, 1, 1]} : vector<8x8x32xi1> to vector<1x8x32xi1>
    %133 = vector.shape_cast %132 : vector<1x8x32xi1> to vector<8x32xi1>
    %134 = arith.select %133, %129, %105 : vector<8x32xi1>, vector<8x32xf32>
    %135 = tpu.concatenate %131, %131 in 1 : vector<8x32xf32>, vector<8x32xf32> -> vector<8x64xf32>
    %136 = vector.extract_strided_slice %20 {offsets = [3, 0, 0], sizes = [1, 8, 64], strides = [1, 1, 1]} : vector<8x8x64xi1> to vector<1x8x64xi1>
    %137 = vector.shape_cast %136 : vector<1x8x64xi1> to vector<8x64xi1>
    %138 = arith.select %137, %135, %109 : vector<8x64xi1>, vector<8x64xf32>
    %c4 = arith.constant 4 : index
    %c0_30 = arith.constant 0 : index
    %c0_31 = arith.constant 0 : index
    %139 = vector.load %arg2[%c4, %c0_30, %c0_31] : memref<8x8x128xf32, #tpu.memory_space<vmem>>, vector<1x8x128xf32>
    %140 = vector.shape_cast %139 : vector<1x8x128xf32> to vector<8x128xf32>
    %cst_32 = arith.constant dense<0.000000e+00> : vector<8x128xf32>
    %141 = tpu.matmul %138, %0, %cst_32 {dimension_numbers = #tpu.dot_dimension_numbers<[1], [0], [0], [1], [0, 0, 1, 1], [], []>} : vector<8x64xf32>, vector<64x128xf32>, vector<8x128xf32> -> vector<8x128xf32>
    %142 = arith.addf %140, %141 : vector<8x128xf32>
    %143 = arith.negf %142 : vector<8x128xf32>
    %144 = math.exp %143 : vector<8x128xf32>
    %cst_33 = arith.constant 1.000000e+00 : f32
    %145 = vector.broadcast %cst_33 : f32 to vector<8x128xf32>
    %146 = arith.addf %145, %144 : vector<8x128xf32>
    %147 = arith.divf %145, %146 : vector<8x128xf32>
    %148 = vector.extract_strided_slice %147 {offsets = [0, 0], sizes = [8, 32], strides = [1, 1]} : vector<8x128xf32> to vector<8x32xf32>
    %149 = vector.extract_strided_slice %147 {offsets = [0, 32], sizes = [8, 32], strides = [1, 1]} : vector<8x128xf32> to vector<8x32xf32>
    %150 = vector.extract_strided_slice %147 {offsets = [0, 64], sizes = [8, 32], strides = [1, 1]} : vector<8x128xf32> to vector<8x32xf32>
    %cst_34 = arith.constant 2.000000e+00 : f32
    %151 = vector.broadcast %cst_34 : f32 to vector<8x32xf32>
    %152 = arith.mulf %151, %150 : vector<8x32xf32>
    %cst_35 = arith.constant 1.000000e+00 : f32
    %153 = vector.broadcast %cst_35 : f32 to vector<8x32xf32>
    %154 = arith.subf %152, %153 : vector<8x32xf32>
    %155 = vector.extract_strided_slice %147 {offsets = [0, 96], sizes = [8, 32], strides = [1, 1]} : vector<8x128xf32> to vector<8x32xf32>
    %156 = arith.mulf %149, %134 : vector<8x32xf32>
    %157 = arith.mulf %148, %154 : vector<8x32xf32>
    %158 = arith.addf %156, %157 : vector<8x32xf32>
    %159 = math.tanh %158 : vector<8x32xf32>
    %160 = arith.mulf %155, %159 : vector<8x32xf32>
    %161 = vector.extract_strided_slice %7 {offsets = [4, 0, 0], sizes = [1, 8, 32], strides = [1, 1, 1]} : vector<8x8x32xi1> to vector<1x8x32xi1>
    %162 = vector.shape_cast %161 : vector<1x8x32xi1> to vector<8x32xi1>
    %163 = arith.select %162, %158, %134 : vector<8x32xi1>, vector<8x32xf32>
    %164 = tpu.concatenate %160, %160 in 1 : vector<8x32xf32>, vector<8x32xf32> -> vector<8x64xf32>
    %165 = vector.extract_strided_slice %20 {offsets = [4, 0, 0], sizes = [1, 8, 64], strides = [1, 1, 1]} : vector<8x8x64xi1> to vector<1x8x64xi1>
    %166 = vector.shape_cast %165 : vector<1x8x64xi1> to vector<8x64xi1>
    %167 = arith.select %166, %164, %138 : vector<8x64xi1>, vector<8x64xf32>
    %c5 = arith.constant 5 : index
    %c0_36 = arith.constant 0 : index
    %c0_37 = arith.constant 0 : index
    %168 = vector.load %arg2[%c5, %c0_36, %c0_37] : memref<8x8x128xf32, #tpu.memory_space<vmem>>, vector<1x8x128xf32>
    %169 = vector.shape_cast %168 : vector<1x8x128xf32> to vector<8x128xf32>
    %cst_38 = arith.constant dense<0.000000e+00> : vector<8x128xf32>
    %170 = tpu.matmul %167, %0, %cst_38 {dimension_numbers = #tpu.dot_dimension_numbers<[1], [0], [0], [1], [0, 0, 1, 1], [], []>} : vector<8x64xf32>, vector<64x128xf32>, vector<8x128xf32> -> vector<8x128xf32>
    %171 = arith.addf %169, %170 : vector<8x128xf32>
    %172 = arith.negf %171 : vector<8x128xf32>
    %173 = math.exp %172 : vector<8x128xf32>
    %cst_39 = arith.constant 1.000000e+00 : f32
    %174 = vector.broadcast %cst_39 : f32 to vector<8x128xf32>
    %175 = arith.addf %174, %173 : vector<8x128xf32>
    %176 = arith.divf %174, %175 : vector<8x128xf32>
    %177 = vector.extract_strided_slice %176 {offsets = [0, 0], sizes = [8, 32], strides = [1, 1]} : vector<8x128xf32> to vector<8x32xf32>
    %178 = vector.extract_strided_slice %176 {offsets = [0, 32], sizes = [8, 32], strides = [1, 1]} : vector<8x128xf32> to vector<8x32xf32>
    %179 = vector.extract_strided_slice %176 {offsets = [0, 64], sizes = [8, 32], strides = [1, 1]} : vector<8x128xf32> to vector<8x32xf32>
    %cst_40 = arith.constant 2.000000e+00 : f32
    %180 = vector.broadcast %cst_40 : f32 to vector<8x32xf32>
    %181 = arith.mulf %180, %179 : vector<8x32xf32>
    %cst_41 = arith.constant 1.000000e+00 : f32
    %182 = vector.broadcast %cst_41 : f32 to vector<8x32xf32>
    %183 = arith.subf %181, %182 : vector<8x32xf32>
    %184 = vector.extract_strided_slice %176 {offsets = [0, 96], sizes = [8, 32], strides = [1, 1]} : vector<8x128xf32> to vector<8x32xf32>
    %185 = arith.mulf %178, %163 : vector<8x32xf32>
    %186 = arith.mulf %177, %183 : vector<8x32xf32>
    %187 = arith.addf %185, %186 : vector<8x32xf32>
    %188 = math.tanh %187 : vector<8x32xf32>
    %189 = arith.mulf %184, %188 : vector<8x32xf32>
    %190 = vector.extract_strided_slice %7 {offsets = [5, 0, 0], sizes = [1, 8, 32], strides = [1, 1, 1]} : vector<8x8x32xi1> to vector<1x8x32xi1>
    %191 = vector.shape_cast %190 : vector<1x8x32xi1> to vector<8x32xi1>
    %192 = arith.select %191, %187, %163 : vector<8x32xi1>, vector<8x32xf32>
    %193 = tpu.concatenate %189, %189 in 1 : vector<8x32xf32>, vector<8x32xf32> -> vector<8x64xf32>
    %194 = vector.extract_strided_slice %20 {offsets = [5, 0, 0], sizes = [1, 8, 64], strides = [1, 1, 1]} : vector<8x8x64xi1> to vector<1x8x64xi1>
    %195 = vector.shape_cast %194 : vector<1x8x64xi1> to vector<8x64xi1>
    %196 = arith.select %195, %193, %167 : vector<8x64xi1>, vector<8x64xf32>
    %c6 = arith.constant 6 : index
    %c0_42 = arith.constant 0 : index
    %c0_43 = arith.constant 0 : index
    %197 = vector.load %arg2[%c6, %c0_42, %c0_43] : memref<8x8x128xf32, #tpu.memory_space<vmem>>, vector<1x8x128xf32>
    %198 = vector.shape_cast %197 : vector<1x8x128xf32> to vector<8x128xf32>
    %cst_44 = arith.constant dense<0.000000e+00> : vector<8x128xf32>
    %199 = tpu.matmul %196, %0, %cst_44 {dimension_numbers = #tpu.dot_dimension_numbers<[1], [0], [0], [1], [0, 0, 1, 1], [], []>} : vector<8x64xf32>, vector<64x128xf32>, vector<8x128xf32> -> vector<8x128xf32>
    %200 = arith.addf %198, %199 : vector<8x128xf32>
    %201 = arith.negf %200 : vector<8x128xf32>
    %202 = math.exp %201 : vector<8x128xf32>
    %cst_45 = arith.constant 1.000000e+00 : f32
    %203 = vector.broadcast %cst_45 : f32 to vector<8x128xf32>
    %204 = arith.addf %203, %202 : vector<8x128xf32>
    %205 = arith.divf %203, %204 : vector<8x128xf32>
    %206 = vector.extract_strided_slice %205 {offsets = [0, 0], sizes = [8, 32], strides = [1, 1]} : vector<8x128xf32> to vector<8x32xf32>
    %207 = vector.extract_strided_slice %205 {offsets = [0, 32], sizes = [8, 32], strides = [1, 1]} : vector<8x128xf32> to vector<8x32xf32>
    %208 = vector.extract_strided_slice %205 {offsets = [0, 64], sizes = [8, 32], strides = [1, 1]} : vector<8x128xf32> to vector<8x32xf32>
    %cst_46 = arith.constant 2.000000e+00 : f32
    %209 = vector.broadcast %cst_46 : f32 to vector<8x32xf32>
    %210 = arith.mulf %209, %208 : vector<8x32xf32>
    %cst_47 = arith.constant 1.000000e+00 : f32
    %211 = vector.broadcast %cst_47 : f32 to vector<8x32xf32>
    %212 = arith.subf %210, %211 : vector<8x32xf32>
    %213 = vector.extract_strided_slice %205 {offsets = [0, 96], sizes = [8, 32], strides = [1, 1]} : vector<8x128xf32> to vector<8x32xf32>
    %214 = arith.mulf %207, %192 : vector<8x32xf32>
    %215 = arith.mulf %206, %212 : vector<8x32xf32>
    %216 = arith.addf %214, %215 : vector<8x32xf32>
    %217 = math.tanh %216 : vector<8x32xf32>
    %218 = arith.mulf %213, %217 : vector<8x32xf32>
    %219 = vector.extract_strided_slice %7 {offsets = [6, 0, 0], sizes = [1, 8, 32], strides = [1, 1, 1]} : vector<8x8x32xi1> to vector<1x8x32xi1>
    %220 = vector.shape_cast %219 : vector<1x8x32xi1> to vector<8x32xi1>
    %221 = arith.select %220, %216, %192 : vector<8x32xi1>, vector<8x32xf32>
    %222 = tpu.concatenate %218, %218 in 1 : vector<8x32xf32>, vector<8x32xf32> -> vector<8x64xf32>
    %223 = vector.extract_strided_slice %20 {offsets = [6, 0, 0], sizes = [1, 8, 64], strides = [1, 1, 1]} : vector<8x8x64xi1> to vector<1x8x64xi1>
    %224 = vector.shape_cast %223 : vector<1x8x64xi1> to vector<8x64xi1>
    %225 = arith.select %224, %222, %196 : vector<8x64xi1>, vector<8x64xf32>
    %c7 = arith.constant 7 : index
    %c0_48 = arith.constant 0 : index
    %c0_49 = arith.constant 0 : index
    %226 = vector.load %arg2[%c7, %c0_48, %c0_49] : memref<8x8x128xf32, #tpu.memory_space<vmem>>, vector<1x8x128xf32>
    %227 = vector.shape_cast %226 : vector<1x8x128xf32> to vector<8x128xf32>
    %cst_50 = arith.constant dense<0.000000e+00> : vector<8x128xf32>
    %228 = tpu.matmul %225, %0, %cst_50 {dimension_numbers = #tpu.dot_dimension_numbers<[1], [0], [0], [1], [0, 0, 1, 1], [], []>} : vector<8x64xf32>, vector<64x128xf32>, vector<8x128xf32> -> vector<8x128xf32>
    %229 = arith.addf %227, %228 : vector<8x128xf32>
    %230 = arith.negf %229 : vector<8x128xf32>
    %231 = math.exp %230 : vector<8x128xf32>
    %cst_51 = arith.constant 1.000000e+00 : f32
    %232 = vector.broadcast %cst_51 : f32 to vector<8x128xf32>
    %233 = arith.addf %232, %231 : vector<8x128xf32>
    %234 = arith.divf %232, %233 : vector<8x128xf32>
    %235 = vector.extract_strided_slice %234 {offsets = [0, 0], sizes = [8, 32], strides = [1, 1]} : vector<8x128xf32> to vector<8x32xf32>
    %236 = vector.extract_strided_slice %234 {offsets = [0, 32], sizes = [8, 32], strides = [1, 1]} : vector<8x128xf32> to vector<8x32xf32>
    %237 = vector.extract_strided_slice %234 {offsets = [0, 64], sizes = [8, 32], strides = [1, 1]} : vector<8x128xf32> to vector<8x32xf32>
    %cst_52 = arith.constant 2.000000e+00 : f32
    %238 = vector.broadcast %cst_52 : f32 to vector<8x32xf32>
    %239 = arith.mulf %238, %237 : vector<8x32xf32>
    %cst_53 = arith.constant 1.000000e+00 : f32
    %240 = vector.broadcast %cst_53 : f32 to vector<8x32xf32>
    %241 = arith.subf %239, %240 : vector<8x32xf32>
    %242 = vector.extract_strided_slice %234 {offsets = [0, 96], sizes = [8, 32], strides = [1, 1]} : vector<8x128xf32> to vector<8x32xf32>
    %243 = arith.mulf %236, %221 : vector<8x32xf32>
    %244 = arith.mulf %235, %241 : vector<8x32xf32>
    %245 = arith.addf %243, %244 : vector<8x32xf32>
    %246 = math.tanh %245 : vector<8x32xf32>
    %247 = arith.mulf %242, %246 : vector<8x32xf32>
    %248 = tpu.concatenate %247, %247 in 1 : vector<8x32xf32>, vector<8x32xf32> -> vector<8x64xf32>
    %249 = vector.extract_strided_slice %20 {offsets = [7, 0, 0], sizes = [1, 8, 64], strides = [1, 1, 1]} : vector<8x8x64xi1> to vector<1x8x64xi1>
    %250 = vector.shape_cast %249 : vector<1x8x64xi1> to vector<8x64xi1>
    %251 = arith.select %250, %248, %225 : vector<8x64xi1>, vector<8x64xf32>
    %252 = vector.extract_strided_slice %251 {offsets = [0, 0], sizes = [4, 64], strides = [1, 1]} : vector<8x64xf32> to vector<4x64xf32>
    %253 = vector.extract_strided_slice %251 {offsets = [4, 0], sizes = [4, 64], strides = [1, 1]} : vector<8x64xf32> to vector<4x64xf32>
    %254 = arith.addf %252, %253 : vector<4x64xf32>
    %cst_54 = arith.constant 0.000000e+00 : f32
    %255 = vector.broadcast %cst_54 : f32 to vector<4x64xf32>
    %256 = tpu.concatenate %254, %255 in 0 : vector<4x64xf32>, vector<4x64xf32> -> vector<8x64xf32>
    %c0_55 = arith.constant 0 : index
    %c0_56 = arith.constant 0 : index
    %257 = vector.load %arg4[%c0_55, %c0_56] : memref<64x128xf32, #tpu.memory_space<vmem>>, vector<64x128xf32>
    %cst_57 = arith.constant dense<0.000000e+00> : vector<8x128xf32>
    %258 = tpu.matmul %256, %257, %cst_57 {dimension_numbers = #tpu.dot_dimension_numbers<[1], [0], [0], [1], [0, 0, 1, 1], [], []>} : vector<8x64xf32>, vector<64x128xf32>, vector<8x128xf32> -> vector<8x128xf32>
    %c0_58 = arith.constant 0 : index
    %c0_59 = arith.constant 0 : index
    %259 = vector.load %arg5[%c0_58, %c0_59] : memref<1x128xf32, #tpu.memory_space<vmem>>, vector<1x128xf32>
    %260 = vector.broadcast %259 : vector<1x128xf32> to vector<8x128xf32>
    %261 = arith.addf %258, %260 : vector<8x128xf32>
    %c0_60 = arith.constant 0 : index
    %c0_61 = arith.constant 0 : index
    %262 = vector.load %arg6[%c0_60, %c0_61] : memref<8x128xf32, #tpu.memory_space<vmem>>, vector<8x128xf32>
    tpu.vector_store %arg6[%c0_60, %c0_61], %261 {strides = array<i32>} : memref<8x128xf32, #tpu.memory_space<vmem>>, vector<8x128xf32>,
    return
  }
  func.func @transform_0(%arg0: i32) -> (i32, i32) {
    %c0_i32 = arith.constant 0 : i32
    %c0_i32_0 = arith.constant 0 : i32
    %c0_i32_1 = arith.constant 0 : i32
    return %c0_i32, %c0_i32_0 : i32, i32
  }
  func.func @transform_1(%arg0: i32) -> (i32, i32, i32) {
    %c0_i32 = arith.constant 0 : i32
    %c0_i32_0 = arith.constant 0 : i32
    %c0_i32_1 = arith.constant 0 : i32
    %c0_i32_2 = arith.constant 0 : i32
    return %c0_i32, %c0_i32_0, %c0_i32_1 : i32, i32, i32
  }
  func.func @transform_2(%arg0: i32) -> (i32, i32) {
    %c0_i32 = arith.constant 0 : i32
    %c0_i32_0 = arith.constant 0 : i32
    %c0_i32_1 = arith.constant 0 : i32
    return %c0_i32, %c0_i32_0 : i32, i32
  }
  func.func @transform_3(%arg0: i32) -> (i32, i32) {
    %c0_i32 = arith.constant 0 : i32
    %c0_i32_0 = arith.constant 0 : i32
    %c0_i32_1 = arith.constant 0 : i32
    return %c0_i32, %c0_i32_0 : i32, i32
  }
  func.func @transform_4(%arg0: i32) -> (i32, i32) {
    %c0_i32 = arith.constant 0 : i32
    %c0_i32_0 = arith.constant 0 : i32
    %c0_i32_1 = arith.constant 0 : i32
    return %c0_i32, %c0_i32_0 : i32, i32
  }
  func.func @transform_5(%arg0: i32) -> (i32, i32) {
    %c0_i32 = arith.constant 0 : i32
    %c0_i32_0 = arith.constant 0 : i32
    %c0_i32_1 = arith.constant 0 : i32
    return %c0_i32, %c0_i32_0 : i32, i32
  }
}

</mosaic_0001>

<bundles_post_ra>
// kernel: tc_lstm_forward.1
= control target key start
LH: loop header
LB: loop body
LE: loop exit
PB: predicated region body
PF: predicated region fallthrough
CT: control target
= control target key end

     0   :  { %v1422_v0 = vmov 0.0   ;;  %vm1423_vm0 = vmmov 0   ;;  %s1424_s10 = smov 64   ;;  %s1425_s11 = smov 32   ;;  %v1426_v21 = vmov 0   ;;  %v37_v30 = vlaneseq  ;;  %s1812_s2 = inlined_call_operand.vmem [shape: f32[64,128], index: 2, kind: input, shape index: {}]   ;;  %s1813_s1 = inlined_call_operand.vmem [shape: f32[8,8,128], index: 1, kind: input, shape index: {}]   ;;  %s1814_s0 = inlined_call_operand.vmem [shape: s32[8,1], index: 0, kind: input, shape index: {}]   ;;  %s1815_s3 = inlined_call_operand.vmem [shape: f32[64,128], index: 3, kind: input, shape index: {}]   ;;  %s1816_s4 = inlined_call_operand.vmem [shape: f32[1,128], index: 4, kind: input, shape index: {}]   ;;  %s1817_s5 = inlined_call_operand.vmem [shape: f32[8,128], index: 5, kind: output, shape index: {}]  }
   0x1   :  { %1195 = vmatprep.subr.mxu0 %v1422_v0  ;;  %v1462_v1 = vld [vmem:[%s1812_s2 + $0x38] sm:$0xff]  ;;  %v1467_v2 = vld [vmem:[%s1812_s2 + $0x30] sm:$0xff]  ;;  %1211 = vmatprep.mubr.msk.f32.mxu0 %vm1423_vm0, %v1422_v0  ;;  %v1477_v3 = vld [vmem:[%s1812_s2 + $0x28] sm:$0xff]  ;;  %vm1427_vm5 = vmmov 1   ;;  %vm204_vm7 = vcmask 261120   ;;  %vm96_vm9 = vcmask 523264  }
   0x2   :  { %1196 = vmatpush3.msra.mxu0 %v1462_v1  ;;  %1214 = vmatprep.subr.mxu1 %v1422_v0  ;;  %v1486_v4 = vld [vmem:[%s1812_s2 + $0x20] sm:$0xff]  ;;  %v1495_v5 = vld [vmem:[%s1812_s2 + $0x18] sm:$0xff]  ;;  %v1504_v6 = vld [vmem:[%s1812_s2 + $0x10] sm:$0xff]  ;;  %v38_v31 = vshrl.u32 %v37_v30, 7  ;;  %v40_v32 = vand.u32 127, %v37_v30 }
   0x3   :  { %1197 = vmatprep.subr.mxu0 %v1422_v0  ;;  %1215 = vmatpush3.msra.mxu1 %v1462_v1  ;;  %v1513_v7 = vld [vmem:[%s1812_s2 + $0x8] sm:$0xff]  ;;  %v1522_v8 = vld [vmem:[%s1812_s2] sm:$0xff] }
   0x4   :  { %1198 = vmatpush3.msra.mxu0 %v1467_v2  ;;  %1216 = vmatprep.subr.mxu1 %v1422_v0  ;;  %v95_v9 = vld [vmem:[%s1813_s1] sm:$0xff]  ;;  %vm41_vm2 = vcmp.lt.s32.totalorder %v38_v31, 4  ;;  %vm42_vm3 = vcmp.lt.s32.totalorder %v40_v32, 32  ;;  %v1084_v39 = vld [vmem:[%s1813_s1 + $0x8] sm:$0xff] }
   0x5   :  { %1199 = vmatprep.subr.mxu0 %v1422_v0  ;;  %1217 = vmatpush3.msra.mxu1 %v1467_v2  ;;  %v1568_v25 = vld [vmem:[%s1814_s0] sm:$0xff]  ;;  %vm43_vm4 = vmxor %vm41_vm2, %vm42_vm3 }
   0x6   :  { %1200 = vmatpush3.msra.mxu0 %v1477_v3  ;;  %1218 = vmatprep.subr.mxu1 %v1422_v0  ;;  %vm29_vm1 = vcmp.gt.s32.totalorder %v1568_v25, 0  ;;  %vm1575_vm6 = vmxor %vm43_vm4, %vm1427_vm5  ;;  %vm30_vm11 = vcmp.gt.s32.totalorder %v1568_v25, 1  ;;  %vm31_vm14 = vcmp.gt.s32.totalorder %v1568_v25, 2  ;;  %vm32_vm2 = vcmp.gt.s32.totalorder %v1568_v25, 3 }
   0x7   :  { %1201 = vmatprep.subr.mxu0 %v1422_v0  ;;  %1219 = vmatpush3.msra.mxu1 %v1477_v3  ;;  %v45_v27 = vsel %vm29_vm1, 1, %v1426_v21  ;;  %v46_v51 = vsel %vm30_vm11, 1, %v1426_v21  ;;  %vm33_vm5 = vcmp.gt.s32.totalorder %v1568_v25, 4  ;;  %vm34_vm11 = vcmp.gt.s32.totalorder %v1568_v25, 5 }
   0x8   :  { %1202 = vmatpush3.msra.mxu0 %v1486_v4  ;;  %1220 = vmatprep.subr.mxu1 %v1422_v0 }
   0x9   :  { %1203 = vmatprep.subr.mxu0 %v1422_v0  ;;  %1221 = vmatpush3.msra.mxu1 %v1486_v4 }
   0xa   :  { %1204 = vmatpush3.msra.mxu0 %v1495_v5  ;;  %1222 = vmatprep.subr.mxu1 %v1422_v0 }
   0xb   :  { %1205 = vmatprep.subr.mxu0 %v1422_v0  ;;  %1223 = vmatpush3.msra.mxu1 %v1495_v5 }
   0xc   :  { %1206 = vmatpush3.msra.mxu0 %v1504_v6  ;;  %1224 = vmatprep.subr.mxu1 %v1422_v0 }
   0xd   :  { %1207 = vmatprep.subr.mxu0 %v1422_v0  ;;  %1225 = vmatpush3.msra.mxu1 %v1504_v6 }
   0xe   :  { %1208 = vmatpush3.msra.mxu0 %v1513_v7  ;;  %1226 = vmatprep.subr.mxu1 %v1422_v0 }
   0xf   :  { %1209 = vmatprep.subr.mxu0 %v1422_v0  ;;  %1227 = vmatpush3.msra.mxu1 %v1513_v7 }
  0x10   :  { %1210 = vmatpush3.msra.mxu0 %v1522_v8  ;;  %1228 = vmatprep.subr.mxu1 %v1422_v0 }
  0x11   :  { %1212 = vmatmul.mubr.f32.vlgmr.msra.gmra.mxu0 %v1422_v0  ;;  %1229 = vmatpush3.msra.mxu1 %v1522_v8 }
  0x12   :  { %1230 = vmatprep.mubr.msk.f32.mxu1 %vm1423_vm0, %v1422_v0  ;;  %1233 = vmatprep.subr.mxu0 %v1422_v0 }
  0x13   :  { %1234 = vmatpush3.msra.mxu0 %v1462_v1  ;;  %1249 = vmatprep.mubr.msk.f32.mxu0 %vm1423_vm0, %v1422_v0 }
  0x14   :  { %1235 = vmatprep.subr.mxu0 %v1422_v0  ;;  %1252 = vmatprep.subr.mxu1 %v1422_v0 }
  0x15   :  { %1236 = vmatpush3.msra.mxu0 %v1467_v2  ;;  %1372 = vset.pattern.permute.xlu1 %v1426_v21 }
  0x16   :  { %1237 = vmatprep.subr.mxu0 %v1422_v0  ;;  %1373 = vset.pattern.permute.xlu0 %v1426_v21 }
  0x17   :  { %1238 = vmatpush3.msra.mxu0 %v1477_v3 }
  0x18   :  { %1239 = vmatprep.subr.mxu0 %v1422_v0 }
  0x19   :  { %1240 = vmatpush3.msra.mxu0 %v1486_v4 }
  0x1a   :  { %1241 = vmatprep.subr.mxu0 %v1422_v0 }
  0x1b   :  { %1242 = vmatpush3.msra.mxu0 %v1495_v5 }
  0x1c   :  { %1243 = vmatprep.subr.mxu0 %v1422_v0 }
  0x1d   :  { %1244 = vmatpush3.msra.mxu0 %v1504_v6 }
  0x1e   :  { %1245 = vmatprep.subr.mxu0 %v1422_v0 }
  0x1f   :  { %1246 = vmatpush3.msra.mxu0 %v1513_v7 }
  0x20   :  { %1247 = vmatprep.subr.mxu0 %v1422_v0 }
  0x21   :  { %1248 = vmatpush3.msra.mxu0 %v1522_v8 }
  0x22   :  { %1271 = vmatprep.subr.mxu0 %v1422_v0 }
  0xd1   :  { %v166_v10 = vpop.f32.mrf.mxu0 }
  0xd2   :  { %v170_v11 = vadd.f32 %v166_v10, %v95_v9  ;;  %v1088_v10 = vld [vmem:[%s1813_s1 + $0x10] sm:$0xff] }
  0xd3   :  { %v1213_v12 = vpop.f32.mrf.mxu0 }
  0xd4   :  { %v1082_v13 = vmul.f32 -1.442695, %v170_v11 }
  0xd6   :  { %1374 = vpow2.f32 %v1082_v13 }
  0xe3   :  { %v1375_v14 = vpop.eup %1374 }
  0xe4   :  { %v174_v15 = vadd.f32 1.0, %v1375_v14 }
  0xe6   :  { %1376 = vrcp.f32 %v174_v15 }
  0xf3   :  { %v1377_v16 = vpop.eup %1376 }
  0xf4   :  { %v177_v17 = vmul.f32 2.0, %v1377_v16  ;;  %v179_v22 = vmul.f32 0.0, %v1377_v16 }
  0xf6   :  { %v1083_v18 = vadd.f32 -1.0, %v177_v17 }
  0xf8   :  { %181 = vrot.lane.b32.xlu0 %v1083_v18, %s1424_s10 }
 0x16a   :  { %v182_v19 = vpop.permute.xlu0 %181 }
 0x16b   :  { %v184_v20 = vmul.f32 %v1377_v16, %v182_v19 }
 0x16d   :  { %186 = vrot.lane.b32.xlu0 %v184_v20, %s1425_s11 }
 0x1df   :  { %v187_v23 = vpop.permute.xlu0 %186 }
 0x1e0   :  { %v1562_v24 = vadd.f32 %v187_v23, %v179_v22  ;;  %v47_v23 = vsel %vm31_vm14, 1, %v1426_v21 }
 0x1e2   :  { %1378 = vtanh.f32 %v1562_v24 }
 0x1ef   :  { %v1379_v26 = vpop.eup %1378 }
 0x1f0   :  { %192 = vrot.lane.b32.xlu1 %v1379_v26, %s1424_s10 }
 0x1f4   :  { %54 = vperm.xlu1 %1372, %v45_v27  }
 0x262   :  { %v193_v28 = vpop.permute.xlu1 %192 }
 0x263   :  { %v195_v29 = vmul.f32 %v1377_v16, %v193_v28 }
 0x265   :  { %198 = vrot.lane.b32.xlu0 %v195_v29, %s1425_s11  ;;  %201 = vrot.lane.b32.xlu1 %v195_v29, %s1424_s10 }
 0x26f   :  { %v55_v33 = vpop.permute.xlu1 %54 }
 0x270   :  { %vm77_vm8 = vcmp.eq.s32.totalorder %v55_v33, 1 }
 0x271   :  { %vm87_vm10 = vmand %vm77_vm8, %vm1575_vm6  ;;  %v196_v52 = vsel %vm77_vm8, %v1562_v24, 0.0 }
 0x2d7   :  { %v199_v35 = vpop.permute.xlu0 %198  ;;  %v202_v36 = vpop.permute.xlu1 %201 }
 0x2d8   :  { %v205_v37 = vsel %vm204_vm7, %v199_v35, %v202_v36 }
 0x2d9   :  { %v206_v38 = vsel %vm87_vm10, %v205_v37, 0.0 }
 0x2da   :  { %1231 = vmatmul.mubr.msk.f32.vlgmr.msra.gmra.mxu1 %vm96_vm9, %v206_v38 }
 0x2db   :  { %1253 = vmatpush3.msra.mxu1 %v1462_v1  ;;  %1268 = vmatprep.mubr.msk.f32.mxu1 %vm1423_vm0, %v1422_v0 }
 0x2dc   :  { %1254 = vmatprep.subr.mxu1 %v1422_v0 }
 0x2dd   :  { %1255 = vmatpush3.msra.mxu1 %v1467_v2 }
 0x2de   :  { %1256 = vmatprep.subr.mxu1 %v1422_v0 }
 0x2df   :  { %1257 = vmatpush3.msra.mxu1 %v1477_v3 }
 0x2e0   :  { %1258 = vmatprep.subr.mxu1 %v1422_v0 }
 0x2e1   :  { %1259 = vmatpush3.msra.mxu1 %v1486_v4 }
 0x2e2   :  { %1260 = vmatprep.subr.mxu1 %v1422_v0 }
 0x2e3   :  { %1261 = vmatpush3.msra.mxu1 %v1495_v5 }
 0x2e4   :  { %1262 = vmatprep.subr.mxu1 %v1422_v0 }
 0x2e5   :  { %1263 = vmatpush3.msra.mxu1 %v1504_v6 }
 0x2e6   :  { %1264 = vmatprep.subr.mxu1 %v1422_v0 }
 0x2e7   :  { %1265 = vmatpush3.msra.mxu1 %v1513_v7 }
 0x2e8   :  { %1266 = vmatprep.subr.mxu1 %v1422_v0 }
 0x2e9   :  { %1267 = vmatpush3.msra.mxu1 %v1522_v8 }
 0x2ea   :  { %1290 = vmatprep.subr.mxu1 %v1422_v0 }
 0x39a   :  { %v278_v40 = vpop.f32.mrf.mxu1 }
 0x39b   :  { %v282_v41 = vadd.f32 %v1084_v39, %v278_v40 }
 0x39c   :  { %v1232_v42 = vpop.f32.mrf.mxu1 }
 0x39d   :  { %v1086_v43 = vmul.f32 -1.442695, %v282_v41 }
 0x39f   :  { %1380 = vpow2.f32 %v1086_v43 }
 0x3ac   :  { %v1381_v44 = vpop.eup %1380 }
 0x3ad   :  { %v286_v45 = vadd.f32 1.0, %v1381_v44 }
 0x3af   :  { %1382 = vrcp.f32 %v286_v45 }
 0x3bc   :  { %v1383_v46 = vpop.eup %1382 }
 0x3bd   :  { %v289_v47 = vmul.f32 2.0, %v1383_v46  ;;  %v291_v53 = vmul.f32 %v1383_v46, %v196_v52 }
 0x3bf   :  { %v1087_v48 = vadd.f32 -1.0, %v289_v47 }
 0x3c1   :  { %293 = vrot.lane.b32.xlu0 %v1087_v48, %s1424_s10 }
 0x433   :  { %v294_v49 = vpop.permute.xlu0 %293 }
 0x434   :  { %v296_v50 = vmul.f32 %v1383_v46, %v294_v49 }
 0x436   :  { %298 = vrot.lane.b32.xlu1 %v296_v50, %s1425_s11  ;;  %v48_v50 = vsel %vm32_vm2, 1, %v1426_v21 }
 0x43a   :  { %57 = vperm.xlu1 %1372, %v46_v51  }
 0x4a8   :  { %v299_v54 = vpop.permute.xlu1 %298 }
 0x4a9   :  { %v301_v55 = vadd.f32 %v299_v54, %v291_v53 }
 0x4ab   :  { %1384 = vtanh.f32 %v301_v55 }
 0x4b5   :  { %v58_v56 = vpop.permute.xlu1 %57 }
 0x4b6   :  { %vm78_vm12 = vcmp.eq.s32.totalorder %v58_v56, 1 }
 0x4b7   :  { %v308_v57 = vsel %vm78_vm12, %v301_v55, %v196_v52  ;;  %vm88_vm13 = vmand %vm78_vm12, %vm1575_vm6 }
 0x4b8   :  { %v1385_v58 = vpop.eup %1384 }
 0x4b9   :  { %304 = vrot.lane.b32.xlu0 %v1385_v58, %s1424_s10 }
 0x52b   :  { %v305_v59 = vpop.permute.xlu0 %304 }
 0x52c   :  { %v307_v60 = vmul.f32 %v1383_v46, %v305_v59 }
 0x52e   :  { %313 = vrot.lane.b32.xlu1 %v307_v60, %s1424_s10  ;;  %310 = vrot.lane.b32.xlu0 %v307_v60, %s1425_s11 }
 0x5a0   :  { %v311_v61 = vpop.permute.xlu0 %310  ;;  %v314_v62 = vpop.permute.xlu1 %313 }
 0x5a1   :  { %v316_v63 = vsel %vm204_vm7, %v311_v61, %v314_v62 }
 0x5a2   :  { %v317_v9 = vsel %vm88_vm13, %v316_v63, %v206_v38  ;;  %v1092_v38 = vld [vmem:[%s1813_s1 + $0x18] sm:$0xff]  ;;  %v1096_v63 = vld [vmem:[%s1813_s1 + $0x20] sm:$0xff] }
 0x5a3   :  { %1250 = vmatmul.mubr.msk.f32.vlgmr.msra.gmra.mxu0 %vm96_vm9, %v317_v9 }
 0x5a4   :  { %1272 = vmatpush3.msra.mxu0 %v1462_v1  ;;  %1287 = vmatprep.mubr.msk.f32.mxu0 %vm1423_vm0, %v1422_v0 }
 0x5a5   :  { %1273 = vmatprep.subr.mxu0 %v1422_v0 }
 0x5a6   :  { %1274 = vmatpush3.msra.mxu0 %v1467_v2 }
 0x5a7   :  { %1275 = vmatprep.subr.mxu0 %v1422_v0 }
 0x5a8   :  { %1276 = vmatpush3.msra.mxu0 %v1477_v3 }
 0x5a9   :  { %1277 = vmatprep.subr.mxu0 %v1422_v0 }
 0x5aa   :  { %1278 = vmatpush3.msra.mxu0 %v1486_v4 }
 0x5ab   :  { %1279 = vmatprep.subr.mxu0 %v1422_v0 }
 0x5ac   :  { %1280 = vmatpush3.msra.mxu0 %v1495_v5 }
 0x5ad   :  { %1281 = vmatprep.subr.mxu0 %v1422_v0 }
 0x5ae   :  { %1282 = vmatpush3.msra.mxu0 %v1504_v6 }
 0x5af   :  { %1283 = vmatprep.subr.mxu0 %v1422_v0 }
 0x5b0   :  { %1284 = vmatpush3.msra.mxu0 %v1513_v7 }
 0x5b1   :  { %1285 = vmatprep.subr.mxu0 %v1422_v0 }
 0x5b2   :  { %1286 = vmatpush3.msra.mxu0 %v1522_v8 }
 0x5b3   :  { %1309 = vmatprep.subr.mxu0 %v1422_v0 }
 0x663   :  { %v389_v11 = vpop.f32.mrf.mxu0 }
 0x664   :  { %v393_v12 = vadd.f32 %v1088_v10, %v389_v11 }
 0x665   :  { %v1251_v13 = vpop.f32.mrf.mxu0 }
 0x666   :  { %v1090_v14 = vmul.f32 -1.442695, %v393_v12 }
 0x668   :  { %1386 = vpow2.f32 %v1090_v14 }
 0x675   :  { %v1387_v15 = vpop.eup %1386 }
 0x676   :  { %v397_v16 = vadd.f32 1.0, %v1387_v15 }
 0x678   :  { %1388 = vrcp.f32 %v397_v16 }
 0x685   :  { %v1389_v17 = vpop.eup %1388 }
 0x686   :  { %v400_v18 = vmul.f32 2.0, %v1389_v17  ;;  %v402_v24 = vmul.f32 %v1389_v17, %v308_v57 }
 0x688   :  { %v1091_v19 = vadd.f32 -1.0, %v400_v18 }
 0x68a   :  { %404 = vrot.lane.b32.xlu0 %v1091_v19, %s1424_s10 }
 0x6fc   :  { %v405_v20 = vpop.permute.xlu0 %404 }
 0x6fd   :  { %v407_v22 = vmul.f32 %v1389_v17, %v405_v20  ;;  %v49_v20 = vsel %vm33_vm5, 1, %v1426_v21 }
 0x6ff   :  { %409 = vrot.lane.b32.xlu1 %v407_v22, %s1425_s11 }
 0x703   :  { %60 = vperm.xlu1 %1372, %v47_v23  }
 0x771   :  { %v410_v26 = vpop.permute.xlu1 %409 }
 0x772   :  { %v412_v27 = vadd.f32 %v410_v26, %v402_v24 }
 0x774   :  { %1390 = vtanh.f32 %v412_v27 }
 0x77e   :  { %v61_v28 = vpop.permute.xlu1 %60 }
 0x77f   :  { %vm79_vm15 = vcmp.eq.s32.totalorder %v61_v28, 1 }
 0x780   :  { %v419_v29 = vsel %vm79_vm15, %v412_v27, %v308_v57  ;;  %vm89_vm1 = vmand %vm79_vm15, %vm1575_vm6 }
 0x781   :  { %v1391_v30 = vpop.eup %1390 }
 0x782   :  { %415 = vrot.lane.b32.xlu0 %v1391_v30, %s1424_s10 }
 0x7f4   :  { %v416_v31 = vpop.permute.xlu0 %415 }
 0x7f5   :  { %v418_v32 = vmul.f32 %v1389_v17, %v416_v31 }
 0x7f7   :  { %424 = vrot.lane.b32.xlu1 %v418_v32, %s1424_s10  ;;  %421 = vrot.lane.b32.xlu0 %v418_v32, %s1425_s11 }
 0x869   :  { %v422_v33 = vpop.permute.xlu0 %421  ;;  %v425_v35 = vpop.permute.xlu1 %424 }
 0x86a   :  { %v427_v36 = vsel %vm204_vm7, %v422_v33, %v425_v35 }
 0x86b   :  { %v428_v37 = vsel %vm89_vm1, %v427_v36, %v317_v9  ;;  %vm36_vm1 = vcmp.gt.s32.totalorder %v1568_v25, 7 }
 0x86c   :  { %1269 = vmatmul.mubr.msk.f32.vlgmr.msra.gmra.mxu1 %vm96_vm9, %v428_v37 }
 0x86d   :  { %1291 = vmatpush3.msra.mxu1 %v1462_v1  ;;  %1306 = vmatprep.mubr.msk.f32.mxu1 %vm1423_vm0, %v1422_v0 }
 0x86e   :  { %1292 = vmatprep.subr.mxu1 %v1422_v0 }
 0x86f   :  { %1293 = vmatpush3.msra.mxu1 %v1467_v2 }
 0x870   :  { %1294 = vmatprep.subr.mxu1 %v1422_v0 }
 0x871   :  { %1295 = vmatpush3.msra.mxu1 %v1477_v3 }
 0x872   :  { %1296 = vmatprep.subr.mxu1 %v1422_v0 }
 0x873   :  { %1297 = vmatpush3.msra.mxu1 %v1486_v4 }
 0x874   :  { %1298 = vmatprep.subr.mxu1 %v1422_v0 }
 0x875   :  { %1299 = vmatpush3.msra.mxu1 %v1495_v5 }
 0x876   :  { %1300 = vmatprep.subr.mxu1 %v1422_v0 }
 0x877   :  { %1301 = vmatpush3.msra.mxu1 %v1504_v6 }
 0x878   :  { %1302 = vmatprep.subr.mxu1 %v1422_v0 }
 0x879   :  { %1303 = vmatpush3.msra.mxu1 %v1513_v7 }
 0x87a   :  { %1304 = vmatprep.subr.mxu1 %v1422_v0 }
 0x87b   :  { %1305 = vmatpush3.msra.mxu1 %v1522_v8 }
 0x87c   :  { %1328 = vmatprep.subr.mxu1 %v1422_v0 }
 0x92c   :  { %v500_v39 = vpop.f32.mrf.mxu1 }
 0x92d   :  { %v504_v40 = vadd.f32 %v1092_v38, %v500_v39 }
 0x92e   :  { %v1270_v41 = vpop.f32.mrf.mxu1 }
 0x92f   :  { %v1094_v42 = vmul.f32 -1.442695, %v504_v40 }
 0x931   :  { %1392 = vpow2.f32 %v1094_v42 }
 0x93e   :  { %v1393_v43 = vpop.eup %1392 }
 0x93f   :  { %v508_v44 = vadd.f32 1.0, %v1393_v43 }
 0x941   :  { %1394 = vrcp.f32 %v508_v44 }
 0x94e   :  { %v1395_v45 = vpop.eup %1394 }
 0x94f   :  { %v511_v46 = vmul.f32 2.0, %v1395_v45  ;;  %v513_v51 = vmul.f32 %v1395_v45, %v419_v29 }
 0x951   :  { %v1095_v47 = vadd.f32 -1.0, %v511_v46 }
 0x953   :  { %515 = vrot.lane.b32.xlu0 %v1095_v47, %s1424_s10 }
 0x9c5   :  { %v516_v48 = vpop.permute.xlu0 %515 }
 0x9c6   :  { %v518_v49 = vmul.f32 %v1395_v45, %v516_v48 }
 0x9c8   :  { %520 = vrot.lane.b32.xlu1 %v518_v49, %s1425_s11 }
 0x9cc   :  { %63 = vperm.xlu1 %1372, %v48_v50  }
 0xa3a   :  { %v521_v52 = vpop.permute.xlu1 %520 }
 0xa3b   :  { %v523_v53 = vadd.f32 %v521_v52, %v513_v51 }
 0xa3d   :  { %1396 = vtanh.f32 %v523_v53 }
 0xa47   :  { %v64_v54 = vpop.permute.xlu1 %63 }
 0xa48   :  { %vm80_vm3 = vcmp.eq.s32.totalorder %v64_v54, 1 }
 0xa49   :  { %v530_v55 = vsel %vm80_vm3, %v523_v53, %v419_v29  ;;  %vm90_vm4 = vmand %vm80_vm3, %vm1575_vm6  ;;  %v1104_v53 = vld [vmem:[%s1813_s1 + $0x30] sm:$0xff] }
 0xa4a   :  { %v1397_v56 = vpop.eup %1396 }
 0xa4b   :  { %526 = vrot.lane.b32.xlu0 %v1397_v56, %s1424_s10 }
 0xabd   :  { %v527_v57 = vpop.permute.xlu0 %526 }
 0xabe   :  { %v529_v58 = vmul.f32 %v1395_v45, %v527_v57 }
 0xac0   :  { %535 = vrot.lane.b32.xlu1 %v529_v58, %s1424_s10  ;;  %532 = vrot.lane.b32.xlu0 %v529_v58, %s1425_s11 }
 0xb32   :  { %v533_v59 = vpop.permute.xlu0 %532  ;;  %v536_v60 = vpop.permute.xlu1 %535 }
 0xb33   :  { %v538_v61 = vsel %vm204_vm7, %v533_v59, %v536_v60 }
 0xb34   :  { %v539_v62 = vsel %vm90_vm4, %v538_v61, %v428_v37  ;;  %vm987_vm4 = vcmask 1043456  }
 0xb35   :  { %1288 = vmatmul.mubr.msk.f32.vlgmr.msra.gmra.mxu0 %vm96_vm9, %v539_v62 }
 0xb36   :  { %1310 = vmatpush3.msra.mxu0 %v1462_v1  ;;  %1325 = vmatprep.mubr.msk.f32.mxu0 %vm1423_vm0, %v1422_v0 }
 0xb37   :  { %1311 = vmatprep.subr.mxu0 %v1422_v0 }
 0xb38   :  { %1312 = vmatpush3.msra.mxu0 %v1467_v2 }
 0xb39   :  { %1313 = vmatprep.subr.mxu0 %v1422_v0 }
 0xb3a   :  { %1314 = vmatpush3.msra.mxu0 %v1477_v3 }
 0xb3b   :  { %1315 = vmatprep.subr.mxu0 %v1422_v0 }
 0xb3c   :  { %1316 = vmatpush3.msra.mxu0 %v1486_v4 }
 0xb3d   :  { %1317 = vmatprep.subr.mxu0 %v1422_v0 }
 0xb3e   :  { %1318 = vmatpush3.msra.mxu0 %v1495_v5 }
 0xb3f   :  { %1319 = vmatprep.subr.mxu0 %v1422_v0 }
 0xb40   :  { %1320 = vmatpush3.msra.mxu0 %v1504_v6 }
 0xb41   :  { %1321 = vmatprep.subr.mxu0 %v1422_v0 }
 0xb42   :  { %1322 = vmatpush3.msra.mxu0 %v1513_v7 }
 0xb43   :  { %1323 = vmatprep.subr.mxu0 %v1422_v0 }
 0xb44   :  { %1324 = vmatpush3.msra.mxu0 %v1522_v8 }
 0xb45   :  { %1347 = vmatprep.subr.mxu0 %v1422_v0 }
 0xbf5   :  { %v611_v9 = vpop.f32.mrf.mxu0 }
 0xbf6   :  { %v615_v10 = vadd.f32 %v1096_v63, %v611_v9 }
 0xbf7   :  { %v1289_v11 = vpop.f32.mrf.mxu0 }
 0xbf8   :  { %v1098_v12 = vmul.f32 -1.442695, %v615_v10 }
 0xbfa   :  { %1398 = vpow2.f32 %v1098_v12 }
 0xc07   :  { %v1399_v13 = vpop.eup %1398 }
 0xc08   :  { %v619_v14 = vadd.f32 1.0, %v1399_v13 }
 0xc0a   :  { %1400 = vrcp.f32 %v619_v14 }
 0xc17   :  { %v1401_v15 = vpop.eup %1400 }
 0xc18   :  { %v622_v16 = vmul.f32 2.0, %v1401_v15  ;;  %v624_v22 = vmul.f32 %v1401_v15, %v530_v55 }
 0xc1a   :  { %v1099_v17 = vadd.f32 -1.0, %v622_v16 }
 0xc1c   :  { %626 = vrot.lane.b32.xlu0 %v1099_v17, %s1424_s10 }
 0xc8e   :  { %v627_v18 = vpop.permute.xlu0 %626 }
 0xc8f   :  { %v629_v19 = vmul.f32 %v1401_v15, %v627_v18 }
 0xc91   :  { %631 = vrot.lane.b32.xlu1 %v629_v19, %s1425_s11 }
 0xc95   :  { %66 = vperm.xlu1 %1372, %v49_v20  }
 0xd03   :  { %v632_v23 = vpop.permute.xlu1 %631 }
 0xd04   :  { %v634_v24 = vadd.f32 %v632_v23, %v624_v22 }
 0xd06   :  { %1402 = vtanh.f32 %v634_v24 }
 0xd10   :  { %v67_v26 = vpop.permute.xlu1 %66 }
 0xd11   :  { %vm81_vm8 = vcmp.eq.s32.totalorder %v67_v26, 1 }
 0xd12   :  { %v641_v27 = vsel %vm81_vm8, %v634_v24, %v530_v55  ;;  %vm91_vm10 = vmand %vm81_vm8, %vm1575_vm6  ;;  %v1108_v24 = vld [vmem:[%s1813_s1 + $0x38] sm:$0xff] }
 0xd13   :  { %v1403_v28 = vpop.eup %1402 }
 0xd14   :  { %637 = vrot.lane.b32.xlu0 %v1403_v28, %s1424_s10 }
 0xd86   :  { %v638_v29 = vpop.permute.xlu0 %637 }
 0xd87   :  { %v640_v30 = vmul.f32 %v1401_v15, %v638_v29 }
 0xd89   :  { %646 = vrot.lane.b32.xlu1 %v640_v30, %s1424_s10  ;;  %643 = vrot.lane.b32.xlu0 %v640_v30, %s1425_s11 }
 0xdfb   :  { %v644_v31 = vpop.permute.xlu0 %643  ;;  %v647_v32 = vpop.permute.xlu1 %646 }
 0xdfc   :  { %v649_v33 = vsel %vm204_vm7, %v644_v31, %v647_v32 }
 0xdfd   :  { %v650_v35 = vsel %vm91_vm10, %v649_v33, %v539_v62 }
 0xdfe   :  { %1307 = vmatmul.mubr.msk.f32.vlgmr.msra.gmra.mxu1 %vm96_vm9, %v650_v35 }
 0xdff   :  { %1329 = vmatpush3.msra.mxu1 %v1462_v1  ;;  %1344 = vmatprep.mubr.msk.f32.mxu1 %vm1423_vm0, %v1422_v0  ;;  %v1100_v1 = vld [vmem:[%s1813_s1 + $0x28] sm:$0xff] }
 0xe00   :  { %1330 = vmatprep.subr.mxu1 %v1422_v0 }
 0xe01   :  { %1331 = vmatpush3.msra.mxu1 %v1467_v2 }
 0xe02   :  { %1332 = vmatprep.subr.mxu1 %v1422_v0 }
 0xe03   :  { %1333 = vmatpush3.msra.mxu1 %v1477_v3 }
 0xe04   :  { %1334 = vmatprep.subr.mxu1 %v1422_v0 }
 0xe05   :  { %1335 = vmatpush3.msra.mxu1 %v1486_v4 }
 0xe06   :  { %1336 = vmatprep.subr.mxu1 %v1422_v0 }
 0xe07   :  { %1337 = vmatpush3.msra.mxu1 %v1495_v5 }
 0xe08   :  { %1338 = vmatprep.subr.mxu1 %v1422_v0 }
 0xe09   :  { %1339 = vmatpush3.msra.mxu1 %v1504_v6 }
 0xe0a   :  { %1340 = vmatprep.subr.mxu1 %v1422_v0 }
 0xe0b   :  { %1341 = vmatpush3.msra.mxu1 %v1513_v7 }
 0xe0c   :  { %1342 = vmatprep.subr.mxu1 %v1422_v0 }
 0xe0d   :  { %1343 = vmatpush3.msra.mxu1 %v1522_v8  ;;  %v50_v8 = vsel %vm34_vm11, 1, %v1426_v21 }
 0xebe   :  { %v722_v2 = vpop.f32.mrf.mxu1 }
 0xebf   :  { %v726_v3 = vadd.f32 %v1100_v1, %v722_v2 }
 0xec0   :  { %v1308_v4 = vpop.f32.mrf.mxu1 }
 0xec1   :  { %v1102_v5 = vmul.f32 -1.442695, %v726_v3  ;;  %v52_v3 = vsel %vm36_vm1, 1, %v1426_v21 }
 0xec3   :  { %1404 = vpow2.f32 %v1102_v5 }
 0xed0   :  { %v1405_v36 = vpop.eup %1404 }
 0xed1   :  { %v730_v37 = vadd.f32 1.0, %v1405_v36 }
 0xed3   :  { %1406 = vrcp.f32 %v730_v37  ;;  %v996_v37 = vld [vmem:[%s1815_s3 + $0x38] sm:$0xff] }
 0xee0   :  { %v1407_v6 = vpop.eup %1406 }
 0xee1   :  { %v733_v38 = vmul.f32 2.0, %v1407_v6  ;;  %v735_v41 = vmul.f32 %v1407_v6, %v641_v27 }
 0xee3   :  { %v1103_v39 = vadd.f32 -1.0, %v733_v38 }
 0xee5   :  { %737 = vrot.lane.b32.xlu0 %v1103_v39, %s1424_s10  ;;  %v992_v39 = vld [vmem:[%s1815_s3 + $0x18] sm:$0xff] }
 0xf57   :  { %v738_v7 = vpop.permute.xlu0 %737 }
 0xf58   :  { %v740_v40 = vmul.f32 %v1407_v6, %v738_v7  ;;  %v991_v7 = vld [vmem:[%s1815_s3 + $0x10] sm:$0xff] }
 0xf5a   :  { %742 = vrot.lane.b32.xlu1 %v740_v40, %s1425_s11  ;;  %v990_v40 = vld [vmem:[%s1815_s3 + $0x8] sm:$0xff] }
 0xf5e   :  { %69 = vperm.xlu1 %1372, %v50_v8   ;;  %v989_v8 = vld [vmem:[%s1815_s3] sm:$0xff] }
 0xfcc   :  { %v743_v42 = vpop.permute.xlu1 %742 }
 0xfcd   :  { %v745_v43 = vadd.f32 %v743_v42, %v735_v41 }
 0xfcf   :  { %1408 = vtanh.f32 %v745_v43 }
 0xfd9   :  { %v70_v44 = vpop.permute.xlu1 %69 }
 0xfda   :  { %vm82_vm12 = vcmp.eq.s32.totalorder %v70_v44, 1 }
 0xfdb   :  { %v752_v45 = vsel %vm82_vm12, %v745_v43, %v641_v27  ;;  %vm92_vm13 = vmand %vm82_vm12, %vm1575_vm6 }
 0xfdc   :  { %v1409_v46 = vpop.eup %1408 }
 0xfdd   :  { %748 = vrot.lane.b32.xlu0 %v1409_v46, %s1424_s10 }
0x104f   :  { %v749_v47 = vpop.permute.xlu0 %748 }
0x1050   :  { %v751_v48 = vmul.f32 %v1407_v6, %v749_v47  ;;  %v995_v6 = vld [vmem:[%s1815_s3 + $0x30] sm:$0xff] }
0x1052   :  { %757 = vrot.lane.b32.xlu1 %v751_v48, %s1424_s10  ;;  %754 = vrot.lane.b32.xlu0 %v751_v48, %s1425_s11 }
0x10c4   :  { %v755_v49 = vpop.permute.xlu0 %754  ;;  %v758_v50 = vpop.permute.xlu1 %757 }
0x10c5   :  { %v760_v51 = vsel %vm204_vm7, %v755_v49, %v758_v50  ;;  %v1112_v50 = vld [vmem:[%s1816_s4] ss:$0 sm:$0xff] }
0x10c6   :  { %v761_v52 = vsel %vm92_vm13, %v760_v51, %v650_v35 }
0x10c7   :  { %1326 = vmatmul.mubr.msk.f32.vlgmr.msra.gmra.mxu0 %vm96_vm9, %v761_v52 }
0x10c8   :  { %1363 = vmatprep.mubr.msk.f32.mxu0 %vm1423_vm0, %v1422_v0  ;;  %vm35_vm0 = vcmp.gt.s32.totalorder %v1568_v25, 6  ;;  %1348 = vmatpush3.msra.mxu0 %v996_v37  ;;  %v993_v25 = vld [vmem:[%s1815_s3 + $0x20] sm:$0xff] }
0x10c9   :  { %v51_v10 = vsel %vm35_vm0, 1, %v1426_v21  ;;  %1349 = vmatprep.subr.mxu0 %v1422_v0  ;;  %v994_v21 = vld [vmem:[%s1815_s3 + $0x28] sm:$0xff] }
0x10ca   :  { %1350 = vmatpush3.msra.mxu0 %v995_v6 }
0x10cb   :  { %1351 = vmatprep.subr.mxu0 %v1422_v0 }
0x10cc   :  { %1352 = vmatpush3.msra.mxu0 %v994_v21 }
0x10cd   :  { %1353 = vmatprep.subr.mxu0 %v1422_v0 }
0x10ce   :  { %1354 = vmatpush3.msra.mxu0 %v993_v25 }
0x10cf   :  { %1355 = vmatprep.subr.mxu0 %v1422_v0 }
0x10d0   :  { %1356 = vmatpush3.msra.mxu0 %v992_v39 }
0x10d1   :  { %1357 = vmatprep.subr.mxu0 %v1422_v0 }
0x10d2   :  { %1358 = vmatpush3.msra.mxu0 %v991_v7 }
0x10d3   :  { %1359 = vmatprep.subr.mxu0 %v1422_v0 }
0x10d4   :  { %1360 = vmatpush3.msra.mxu0 %v990_v40 }
0x10d5   :  { %1361 = vmatprep.subr.mxu0 %v1422_v0 }
0x10d6   :  { %1362 = vmatpush3.msra.mxu0 %v989_v8 }
0x1187   :  { %v833_v54 = vpop.f32.mrf.mxu0 }
0x1188   :  { %v837_v55 = vadd.f32 %v1104_v53, %v833_v54 }
0x1189   :  { %v1327_v56 = vpop.f32.mrf.mxu0 }
0x118a   :  { %v1106_v57 = vmul.f32 -1.442695, %v837_v55 }
0x118c   :  { %1410 = vpow2.f32 %v1106_v57 }
0x1199   :  { %v1411_v58 = vpop.eup %1410 }
0x119a   :  { %v841_v59 = vadd.f32 1.0, %v1411_v58 }
0x119c   :  { %1412 = vrcp.f32 %v841_v59 }
0x11a9   :  { %v1413_v60 = vpop.eup %1412 }
0x11aa   :  { %v844_v61 = vmul.f32 2.0, %v1413_v60  ;;  %v846_v11 = vmul.f32 %v1413_v60, %v752_v45 }
0x11ac   :  { %v1107_v62 = vadd.f32 -1.0, %v844_v61 }
0x11ae   :  { %848 = vrot.lane.b32.xlu0 %v1107_v62, %s1424_s10 }
0x1220   :  { %v849_v63 = vpop.permute.xlu0 %848 }
0x1221   :  { %v851_v9 = vmul.f32 %v1413_v60, %v849_v63 }
0x1223   :  { %853 = vrot.lane.b32.xlu1 %v851_v9, %s1425_s11 }
0x1227   :  { %72 = vperm.xlu1 %1372, %v51_v10  }
0x1295   :  { %v854_v12 = vpop.permute.xlu1 %853 }
0x1296   :  { %v856_v13 = vadd.f32 %v854_v12, %v846_v11 }
0x1298   :  { %1414 = vtanh.f32 %v856_v13 }
0x12a2   :  { %v73_v14 = vpop.permute.xlu1 %72 }
0x12a3   :  { %vm83_vm14 = vcmp.eq.s32.totalorder %v73_v14, 1 }
0x12a4   :  { %v863_v15 = vsel %vm83_vm14, %v856_v13, %v752_v45  ;;  %vm93_vm15 = vmand %vm83_vm14, %vm1575_vm6 }
0x12a5   :  { %v1415_v16 = vpop.eup %1414 }
0x12a6   :  { %859 = vrot.lane.b32.xlu0 %v1415_v16, %s1424_s10 }
0x1318   :  { %v860_v17 = vpop.permute.xlu0 %859 }
0x1319   :  { %v862_v18 = vmul.f32 %v1413_v60, %v860_v17 }
0x131b   :  { %868 = vrot.lane.b32.xlu1 %v862_v18, %s1424_s10  ;;  %865 = vrot.lane.b32.xlu0 %v862_v18, %s1425_s11 }
0x138d   :  { %v866_v19 = vpop.permute.xlu0 %865  ;;  %v869_v20 = vpop.permute.xlu1 %868 }
0x138e   :  { %v871_v22 = vsel %vm204_vm7, %v866_v19, %v869_v20 }
0x138f   :  { %v872_v23 = vsel %vm93_vm15, %v871_v22, %v761_v52 }
0x1390   :  { %1345 = vmatmul.mubr.msk.f32.vlgmr.msra.gmra.mxu1 %vm96_vm9, %v872_v23 }
0x1450   :  { %v944_v26 = vpop.f32.mrf.mxu1 }
0x1451   :  { %v948_v27 = vadd.f32 %v1108_v24, %v944_v26 }
0x1452   :  { %v1346_v28 = vpop.f32.mrf.mxu1 }
0x1453   :  { %v1110_v29 = vmul.f32 -1.442695, %v948_v27 }
0x1455   :  { %1416 = vpow2.f32 %v1110_v29 }
0x1462   :  { %v1417_v30 = vpop.eup %1416 }
0x1463   :  { %v952_v31 = vadd.f32 1.0, %v1417_v30 }
0x1465   :  { %1418 = vrcp.f32 %v952_v31 }
0x1472   :  { %v1419_v32 = vpop.eup %1418 }
0x1473   :  { %v955_v33 = vmul.f32 2.0, %v1419_v32  ;;  %v957_v4 = vmul.f32 %v1419_v32, %v863_v15 }
0x1475   :  { %v1111_v35 = vadd.f32 -1.0, %v955_v33 }
0x1477   :  { %959 = vrot.lane.b32.xlu0 %v1111_v35, %s1424_s10 }
0x14e9   :  { %v960_v1 = vpop.permute.xlu0 %959 }
0x14ea   :  { %v962_v2 = vmul.f32 %v1419_v32, %v960_v1 }
0x14ec   :  { %964 = vrot.lane.b32.xlu1 %v962_v2, %s1425_s11 }
0x14f0   :  { %75 = vperm.xlu1 %1372, %v52_v3  }
0x155e   :  { %v965_v5 = vpop.permute.xlu1 %964 }
0x155f   :  { %v967_v36 = vadd.f32 %v965_v5, %v957_v4 }
0x1561   :  { %1420 = vtanh.f32 %v967_v36 }
0x156b   :  { %v76_v43 = vpop.permute.xlu1 %75 }
0x156c   :  { %vm84_vm2 = vcmp.eq.s32.totalorder %v76_v43, 1 }
0x156d   :  { %vm94_vm3 = vmand %vm84_vm2, %vm1575_vm6 }
0x156e   :  { %v1421_v38 = vpop.eup %1420 }
0x156f   :  { %970 = vrot.lane.b32.xlu0 %v1421_v38, %s1424_s10 }
0x15e1   :  { %v971_v41 = vpop.permute.xlu0 %970 }
0x15e2   :  { %v973_v42 = vmul.f32 %v1419_v32, %v971_v41 }
0x15e4   :  { %978 = vrot.lane.b32.xlu1 %v973_v42, %s1424_s10  ;;  %975 = vrot.lane.b32.xlu0 %v973_v42, %s1425_s11 }
0x1656   :  { %v976_v44 = vpop.permute.xlu0 %975  ;;  %v979_v45 = vpop.permute.xlu1 %978 }
0x1657   :  { %v981_v46 = vsel %vm204_vm7, %v976_v44, %v979_v45 }
0x1658   :  { %v982_v47 = vsel %vm94_vm3, %v981_v46, %v872_v23 }
0x1659   :  { %v984_v48 = vrot.slane %v982_v47, 4 }
0x165b   :  { %v986_v0 = vadd.f32 %v984_v48, %v982_v47 }
0x165d   :  { %v988_v49 = vsel %vm987_vm4, %v986_v0, 0.0 }
0x165e   :  { %1364 = vmatmul.mubr.msk.f32.vlgmr.msra.gmra.mxu0 %vm96_vm9, %v988_v49 }
0x171e   :  { %v1073_v51 = vpop.f32.mrf.mxu0 }
0x171f   :  { %v1074_v52 = vadd.f32 %v1112_v50, %v1073_v51 }
0x1720   :  { %v1365_v53 = vpop.f32.mrf.mxu0 }
0x1721   :  { %1077 = vst [vmem:[%s1817_s5] sm:$0xff] %v1074_v52 }

</bundles_post_ra>
